<compile_context>
chip_gen: v6e
topology: v6e:2x2x1
jax: 0.10.0
libtpu: 0.0.40
codegen_flags: <defaults>
</compile_context>

<pallas_src>
import functools

import jax
import jax.numpy as jnp
from jax import lax
from jax.experimental import pallas as pl
from jax.experimental.pallas import tpu as pltpu


_GROUP = 8  # steps per statically-unrolled group (== sublanes per tile row)


def _round_up(x, m):
    return ((x + m - 1) // m) * m


def _lstm_scan_kernel(pre_ref, whh_ref, h0_ref, c0_ref,
                      i_ref, f_ref, h_ref,
                      h_scr, c_scr, *, hidden_size, n_groups):
    """Sequential LSTM scan over one time chunk.

    pre_ref : (CHUNK, 4H) f32   hoisted pre-activations x@W_ih^T + b (g cols x2)
    whh_ref : (H, 4H)     bf16  recurrent weights, transposed (g cols x2)
    h0_ref  : (1, H)      f32   initial hidden state
    c0_ref  : (1, H)      f32   initial cell state
    i_ref   : (CHUNK, H)  f32   per-step input gates
    f_ref   : (CHUNK, H)  f32   per-step forget gates
    h_ref   : (CHUNK, H)  f32   per-step hidden states
    h_scr/c_scr : (1, H)  f32   VMEM scratch carrying h/c across grid steps
    """
    H = hidden_size

    @pl.when(pl.program_id(0) == 0)
    def _init():
        h_scr[...] = h0_ref[...]
        c_scr[...] = c0_ref[...]

    def group_body(j, carry):
        h, c = carry
        base = pl.multiple_of(j * _GROUP, _GROUP)
        # TODO(synk): for H <= 256 keep W_hh resident in the MXU weight
        # registers via pltpu.matmul_push_rhs / matmul_acc_lhs / matmul_pop to
        # drop the per-step weight push from the serial chain.
        for k in range(_GROUP):                       # static unroll
            row = base + k
            pre = pre_ref[pl.ds(row, 1), :]           # (1, 4H) f32
            preact = pre + jnp.dot(h.astype(jnp.bfloat16), whh_ref[...],
                                   preferred_element_type=jnp.float32)
            s = jax.nn.sigmoid(preact)                # one EUP pass over 4H
            i_t = s[:, 0:H]
            f_t = s[:, H:2 * H]
            o_t = s[:, 2 * H:3 * H]
            g_t = 2.0 * s[:, 3 * H:4 * H] - 1.0       # tanh(z)=2*sigmoid(2z)-1
            c = c * f_t + i_t * g_t                   # f32 cell update
            h = o_t * jnp.tanh(c)
            # Direct per-step stores: no register-buffered rows, no concat.
            # TODO(synk): if production H < 128, pad H to 128 lanes so these
            # stores / gate slices stay unmasked.
            i_ref[pl.ds(row, 1), :] = i_t
            f_ref[pl.ds(row, 1), :] = f_t
            h_ref[pl.ds(row, 1), :] = h
        return (h, c)

    h_fin, c_fin = lax.fori_loop(0, n_groups, group_body,
                                 (h_scr[...], c_scr[...]))
    h_scr[...] = h_fin
    c_scr[...] = c_fin


def mylstm_with_gateoutput(input_, params, h0, c0, *, chunk_target=1024):
    """JAX/Pallas equivalent of MYLSTMWithGateoutput.forward.

    input_: (B, T, D) float32
    params: dict with w_ih (4H, D), b_ih (4H,), w_hh (4H, H), b_hh (4H,)
    h0, c0: (H,) initial hidden / cell (analogous to _init_hidden)
    Returns (outputs, forget_gates, input_gates), each (B, T, H).
    """
    B, T, D = input_.shape
    H = params["w_hh"].shape[1]
    G4 = 4 * H
    n_steps = B * T
    f32 = jnp.float32
    bf16 = jnp.bfloat16

    # tanh(z) = 2*sigmoid(2z) - 1 : fold the x2 g-gate pre-scale directly into
    # the weights and bias (exact in bf16, power of two), so the kernel runs a
    # single sigmoid over the full 4H width per step and no extra elementwise
    # pass over the preact tensor is needed.
    gcol = jnp.concatenate([jnp.ones((3 * H,), f32),
                            jnp.full((H,), 2.0, f32)])[None, :]     # (1, 4H)

    w_ih_t = params["w_ih"].T.astype(f32) * gcol                    # (D, 4H)
    w_hh_t = (params["w_hh"].T.astype(f32) * gcol).astype(bf16)     # (H, 4H)
    bias = (params["b_ih"] + params["b_hh"]).reshape(1, G4).astype(f32) * gcol

    x_flat = input_.reshape(n_steps, D)

    # Hoisted input projection: one throughput-shaped bf16 MXU matmul with
    # f32 accumulation, done by XLA outside the sequential scan.
    # TODO(synk): on v7x, chunk this projection and overlap it with the
    # (single-TensorCore) scan instead of serializing it in front.
    preact_ih = jnp.dot(x_flat.astype(bf16), w_ih_t.astype(bf16),
                        preferred_element_type=f32) + bias          # (n,4H)

    # Chunk sizing: streamed working set = double-buffered f32 preact block +
    # three double-buffered f32 output blocks; the resident bf16 W_hh is also
    # double-buffered by the pipeline.  Keep the total under ~24 MiB and set
    # vmem_limit_bytes explicitly (covers v5e's 16 MiB default scope and stays
    # well inside v7x's 64 MiB physical VMEM).
    whh_bytes = 2 * H * G4 * 2                        # dbl-buffered bf16 W_hh
    stream_bytes_per_step = 2 * (G4 * 4 + 3 * H * 4)  # dbl-buf in + 3 outs
    budget = 24 << 20
    chunk = max(_GROUP,
                min(chunk_target,
                    (budget - whh_bytes) // stream_bytes_per_step))
    chunk = min(chunk, _round_up(n_steps, _GROUP))
    chunk = _round_up(chunk, _GROUP)
    n_pad = _round_up(n_steps, chunk)
    n_chunks = n_pad // chunk

    if n_pad != n_steps:
        # Padded tail steps only corrupt the never-returned final h/c carry.
        preact_ih = jnp.pad(preact_ih, ((0, n_pad - n_steps), (0, 0)))

    h0_2d = h0.reshape(1, H).astype(f32)
    c0_2d = c0.reshape(1, H).astype(f32)

    kernel = functools.partial(_lstm_scan_kernel, hidden_size=H,
                               n_groups=chunk // _GROUP)

    vmem_need = whh_bytes + chunk * stream_bytes_per_step + (2 << 20)
    vmem_limit = int(min(max(vmem_need, 32 << 20), 48 << 20))

    igates, fgates, outs = pl.pallas_call(
        kernel,
        out_shape=(jax.ShapeDtypeStruct((n_pad, H), f32),
                   jax.ShapeDtypeStruct((n_pad, H), f32),
                   jax.ShapeDtypeStruct((n_pad, H), f32)),
        grid_spec=pltpu.PrefetchScalarGridSpec(
            num_scalar_prefetch=0,
            grid=(n_chunks,),
            in_specs=[
                pl.BlockSpec((chunk, G4), lambda c: (c, 0)),  # streamed preact
                pl.BlockSpec((H, G4), lambda c: (0, 0)),      # resident W_hh
                pl.BlockSpec((1, H), lambda c: (0, 0)),       # h0
                pl.BlockSpec((1, H), lambda c: (0, 0)),       # c0
            ],
            out_specs=[
                pl.BlockSpec((chunk, H), lambda c: (c, 0)),   # input gates
                pl.BlockSpec((chunk, H), lambda c: (c, 0)),   # forget gates
                pl.BlockSpec((chunk, H), lambda c: (c, 0)),   # hidden states
            ],
            scratch_shapes=[pltpu.VMEM((1, H), f32),          # h carry
                            pltpu.VMEM((1, H), f32)],         # c carry
        ),
        compiler_params=pltpu.CompilerParams(
            dimension_semantics=("arbitrary",),  # sequential carry over time
            vmem_limit_bytes=vmem_limit),
    )(preact_ih, w_hh_t, h0_2d, c0_2d)

    outs = outs[:n_steps].reshape(B, T, H)
    fgates = fgates[:n_steps].reshape(B, T, H)
    igates = igates[:n_steps].reshape(B, T, H)
    return outs, fgates, igates


def mylstm_reference(input_, params, h0, c0):
    """Pure-JAX f32 reference with identical semantics (for validation)."""
    B, T, D = input_.shape
    H = params["w_hh"].shape[1]
    w_ih_t = params["w_ih"].T
    w_hh_t = params["w_hh"].T
    bias = (params["b_ih"] + params["b_hh"]).reshape(1, 4 * H)
    x_flat = input_.reshape(B * T, D)

    def step(carry, x_t):
        h, c = carry
        preact = x_t[None, :] @ w_ih_t + h @ w_hh_t + bias
        i_t = jax.nn.sigmoid(preact[:, 0 * H:1 * H])
        f_t = jax.nn.sigmoid(preact[:, 1 * H:2 * H])
        o_t = jax.nn.sigmoid(preact[:, 2 * H:3 * H])
        g_t = jnp.tanh(preact[:, 3 * H:4 * H])
        c_new = c * f_t + i_t * g_t
        h_new = o_t * jnp.tanh(c_new)
        return (h_new, c_new), (h_new[0], f_t[0], i_t[0])

    (_, _), (hs, fs, is_) = lax.scan(
        step, (h0.reshape(1, H), c0.reshape(1, H)), x_flat)
    return (hs.reshape(B, T, H), fs.reshape(B, T, H), is_.reshape(B, T, H))


if __name__ == "__main__":
    B, T, D, H = 2, 8, 16, 32

    key = jax.random.PRNGKey(0)
    k_x, k_wih, k_bih, k_whh, k_bhh, k_h0, k_c0 = jax.random.split(key, 7)

    # Deterministic parameter init (uniform +-1/sqrt(fan_in), like nn.Linear).
    s_i = 1.0 / (D ** 0.5)
    s_h = 1.0 / (H ** 0.5)
    params = {
        "w_ih": jax.random.uniform(k_wih, (4 * H, D), jnp.float32, -s_i, s_i),
        "b_ih": jax.random.uniform(k_bih, (4 * H,), jnp.float32, -s_i, s_i),
        "w_hh": jax.random.uniform(k_whh, (4 * H, H), jnp.float32, -s_h, s_h),
        "b_hh": jax.random.uniform(k_bhh, (4 * H,), jnp.float32, -s_h, s_h),
    }

    x = jax.random.normal(k_x, (B, T, D), jnp.float32)
    # _init_hidden: hid = randn(H,1), cell = randn(H,1) -> viewed as (1,H).
    h0 = jax.random.normal(k_h0, (H,), jnp.float32)
    c0 = jax.random.normal(k_c0, (H,), jnp.float32)

    outs, fgates, igates = mylstm_with_gateoutput(x, params, h0, c0)
    jax.block_until_ready((outs, fgates, igates))

    ref_outs, ref_f, ref_i = mylstm_reference(x, params, h0, c0)
    assert outs.shape == (B, T, H)
    assert fgates.shape == (B, T, H) and igates.shape == (B, T, H)
    # Tolerance covers the bf16 MXU operands (f32 accumulation), the exact
    # tanh = 2*sigmoid(2x) - 1 rewrite, and matmul reassociation in the
    # hoisted projection; cell state and gate math stay f32 in the kernel.
    assert jnp.allclose(outs, ref_outs, atol=2e-2, rtol=2e-2)
    assert jnp.allclose(fgates, ref_f, atol=2e-2, rtol=2e-2)
    assert jnp.allclose(igates, ref_i, atol=2e-2, rtol=2e-2)

    print("KERNEL_OK")
</pallas_src>

<mosaic_0001>
module attributes {stable_mosaic.version = 11 : i64} {
  func.func @_lstm_scan_kernel(%arg0: i32, %arg1: memref<16x128xf32, #tpu.memory_space<vmem>>, %arg2: memref<32x128xbf16, #tpu.memory_space<vmem>>, %arg3: memref<1x32xf32, #tpu.memory_space<vmem>>, %arg4: memref<1x32xf32, #tpu.memory_space<vmem>>, %arg5: memref<16x32xf32, #tpu.memory_space<vmem>>, %arg6: memref<16x32xf32, #tpu.memory_space<vmem>>, %arg7: memref<16x32xf32, #tpu.memory_space<vmem>>, %arg8: memref<1x32xf32, #tpu.memory_space<vmem>>, %arg9: memref<1x32xf32, #tpu.memory_space<vmem>>) attributes {dimension_semantics = [#tpu.dimension_semantics<arbitrary>], iteration_bounds = array<i64: 1>, scalar_prefetch = 0 : i64, scratch_operands = 2 : i64, tpu.core_type = #tpu.core_type<tc>, window_params = [{transform_indices = @transform_0, window_bounds = array<i64: 16, 128>}, {pipeline_mode = #tpu.pipeline_mode<synchronous>, transform_indices = @transform_1, window_bounds = array<i64: 32, 128>}, {pipeline_mode = #tpu.pipeline_mode<synchronous>, transform_indices = @transform_2, window_bounds = array<i64: 1, 32>}, {pipeline_mode = #tpu.pipeline_mode<synchronous>, transform_indices = @transform_3, window_bounds = array<i64: 1, 32>}, {transform_indices = @transform_4, window_bounds = array<i64: 16, 32>}, {transform_indices = @transform_5, window_bounds = array<i64: 16, 32>}, {transform_indices = @transform_6, window_bounds = array<i64: 16, 32>}]} {
    %c0_i32 = arith.constant 0 : i32
    %0 = arith.cmpi eq, %arg0, %c0_i32 : i32
    %1 = arith.extui %0 : i1 to i32
    %c0_i32_0 = arith.constant 0 : i32
    %2 = arith.cmpi ne, %1, %c0_i32_0 : i32
    scf.if %2 {
      %c0_10 = arith.constant 0 : index
      %c0_11 = arith.constant 0 : index
      %9 = vector.load %arg3[%c0_10, %c0_11] : memref<1x32xf32, #tpu.memory_space<vmem>>, vector<1x32xf32>
      %c0_12 = arith.constant 0 : index
      %c0_13 = arith.constant 0 : index
      %10 = vector.load %arg8[%c0_12, %c0_13] : memref<1x32xf32, #tpu.memory_space<vmem>>, vector<1x32xf32>
      tpu.vector_store %arg8[%c0_12, %c0_13], %9 {strides = array<i32>} : memref<1x32xf32, #tpu.memory_space<vmem>>, vector<1x32xf32>,
      %c0_14 = arith.constant 0 : index
      %c0_15 = arith.constant 0 : index
      %11 = vector.load %arg4[%c0_14, %c0_15] : memref<1x32xf32, #tpu.memory_space<vmem>>, vector<1x32xf32>
      %c0_16 = arith.constant 0 : index
      %c0_17 = arith.constant 0 : index
      %12 = vector.load %arg9[%c0_16, %c0_17] : memref<1x32xf32, #tpu.memory_space<vmem>>, vector<1x32xf32>
      tpu.vector_store %arg9[%c0_16, %c0_17], %11 {strides = array<i32>} : memref<1x32xf32, #tpu.memory_space<vmem>>, vector<1x32xf32>,
    } else {
    }
    %c0 = arith.constant 0 : index
    %c0_1 = arith.constant 0 : index
    %3 = vector.load %arg8[%c0, %c0_1] : memref<1x32xf32, #tpu.memory_space<vmem>>, vector<1x32xf32>
    %c0_2 = arith.constant 0 : index
    %c0_3 = arith.constant 0 : index
    %4 = vector.load %arg9[%c0_2, %c0_3] : memref<1x32xf32, #tpu.memory_space<vmem>>, vector<1x32xf32>
    %c0_i32_4 = arith.constant 0 : i32
    %c2_i32 = arith.constant 2 : i32
    %5 = arith.addi %c0_i32_4, %c2_i32 : i32
    %c1_i32 = arith.constant 1 : i32
    %6:2 = scf.for %arg10 = %c0_i32_4 to %5 step %c1_i32 iter_args(%arg11 = %3, %arg12 = %4) -> (vector<1x32xf32>, vector<1x32xf32>)  : i32 {
      %c8_i32 = arith.constant 8 : i32
      %9 = arith.muli %arg10, %c8_i32 : i32
      %10 = tpu.assume_multiple %9, 8 : i32
      %c0_i32_10 = arith.constant 0 : i32
      %11 = arith.addi %10, %c0_i32_10 : i32
      %12 = arith.index_cast %11 : i32 to index
      %c0_11 = arith.constant 0 : index
      %13 = vector.load %arg1[%12, %c0_11] : memref<16x128xf32, #tpu.memory_space<vmem>>, vector<1x128xf32>
      %14 = arith.truncf %arg11 : vector<1x32xf32> to vector<1x32xbf16>
      %c0_12 = arith.constant 0 : index
      %c0_13 = arith.constant 0 : index
      %15 = vector.load %arg2[%c0_12, %c0_13] : memref<32x128xbf16, #tpu.memory_space<vmem>>, vector<32x128xbf16>
      %cst = arith.constant dense<0.000000e+00> : vector<1x128xf32>
      %16 = tpu.matmul %14, %15, %cst {dimension_numbers = #tpu.dot_dimension_numbers<[1], [0], [0], [1], [0, 0, 1, 1], [], []>} : vector<1x32xbf16>, vector<32x128xbf16>, vector<1x128xf32> -> vector<1x128xf32>
      %17 = arith.addf %13, %16 : vector<1x128xf32>
      %18 = arith.negf %17 : vector<1x128xf32>
      %19 = math.exp %18 : vector<1x128xf32>
      %cst_14 = arith.constant 1.000000e+00 : f32
      %20 = vector.broadcast %cst_14 : f32 to vector<1x128xf32>
      %21 = arith.addf %20, %19 : vector<1x128xf32>
      %22 = arith.divf %20, %21 : vector<1x128xf32>
      %23 = vector.extract_strided_slice %22 {offsets = [0, 0], sizes = [1, 32], strides = [1, 1]} : vector<1x128xf32> to vector<1x32xf32>
      %24 = vector.extract_strided_slice %22 {offsets = [0, 32], sizes = [1, 32], strides = [1, 1]} : vector<1x128xf32> to vector<1x32xf32>
      %25 = vector.extract_strided_slice %22 {offsets = [0, 64], sizes = [1, 32], strides = [1, 1]} : vector<1x128xf32> to vector<1x32xf32>
      %26 = vector.extract_strided_slice %22 {offsets = [0, 96], sizes = [1, 32], strides = [1, 1]} : vector<1x128xf32> to vector<1x32xf32>
      %cst_15 = arith.constant 2.000000e+00 : f32
      %27 = vector.broadcast %cst_15 : f32 to vector<1x32xf32>
      %28 = arith.mulf %27, %26 : vector<1x32xf32>
      %cst_16 = arith.constant 1.000000e+00 : f32
      %29 = vector.broadcast %cst_16 : f32 to vector<1x32xf32>
      %30 = arith.subf %28, %29 : vector<1x32xf32>
      %31 = arith.mulf %arg12, %24 : vector<1x32xf32>
      %32 = arith.mulf %23, %30 : vector<1x32xf32>
      %33 = arith.addf %31, %32 : vector<1x32xf32>
      %34 = math.tanh %33 : vector<1x32xf32>
      %35 = arith.mulf %25, %34 : vector<1x32xf32>
      %36 = arith.index_cast %11 : i32 to index
      %c0_17 = arith.constant 0 : index
      %37 = vector.load %arg5[%36, %c0_17] : memref<16x32xf32, #tpu.memory_space<vmem>>, vector<1x32xf32>
      tpu.vector_store %arg5[%36, %c0_17], %23 {strides = array<i32>} : memref<16x32xf32, #tpu.memory_space<vmem>>, vector<1x32xf32>,
      %38 = arith.index_cast %11 : i32 to index
      %c0_18 = arith.constant 0 : index
      %39 = vector.load %arg6[%38, %c0_18] : memref<16x32xf32, #tpu.memory_space<vmem>>, vector<1x32xf32>
      tpu.vector_store %arg6[%38, %c0_18], %24 {strides = array<i32>} : memref<16x32xf32, #tpu.memory_space<vmem>>, vector<1x32xf32>,
      %40 = arith.index_cast %11 : i32 to index
      %c0_19 = arith.constant 0 : index
      %41 = vector.load %arg7[%40, %c0_19] : memref<16x32xf32, #tpu.memory_space<vmem>>, vector<1x32xf32>
      tpu.vector_store %arg7[%40, %c0_19], %35 {strides = array<i32>} : memref<16x32xf32, #tpu.memory_space<vmem>>, vector<1x32xf32>,
      %c1_i32_20 = arith.constant 1 : i32
      %42 = arith.addi %10, %c1_i32_20 : i32
      %43 = arith.index_cast %42 : i32 to index
      %c0_21 = arith.constant 0 : index
      %44 = vector.load %arg1[%43, %c0_21] : memref<16x128xf32, #tpu.memory_space<vmem>>, vector<1x128xf32>
      %45 = arith.truncf %35 : vector<1x32xf32> to vector<1x32xbf16>
      %c0_22 = arith.constant 0 : index
      %c0_23 = arith.constant 0 : index
      %46 = vector.load %arg2[%c0_22, %c0_23] : memref<32x128xbf16, #tpu.memory_space<vmem>>, vector<32x128xbf16>
      %cst_24 = arith.constant dense<0.000000e+00> : vector<1x128xf32>
      %47 = tpu.matmul %45, %46, %cst_24 {dimension_numbers = #tpu.dot_dimension_numbers<[1], [0], [0], [1], [0, 0, 1, 1], [], []>} : vector<1x32xbf16>, vector<32x128xbf16>, vector<1x128xf32> -> vector<1x128xf32>
      %48 = arith.addf %44, %47 : vector<1x128xf32>
      %49 = arith.negf %48 : vector<1x128xf32>
      %50 = math.exp %49 : vector<1x128xf32>
      %cst_25 = arith.constant 1.000000e+00 : f32
      %51 = vector.broadcast %cst_25 : f32 to vector<1x128xf32>
      %52 = arith.addf %51, %50 : vector<1x128xf32>
      %53 = arith.divf %51, %52 : vector<1x128xf32>
      %54 = vector.extract_strided_slice %53 {offsets = [0, 0], sizes = [1, 32], strides = [1, 1]} : vector<1x128xf32> to vector<1x32xf32>
      %55 = vector.extract_strided_slice %53 {offsets = [0, 32], sizes = [1, 32], strides = [1, 1]} : vector<1x128xf32> to vector<1x32xf32>
      %56 = vector.extract_strided_slice %53 {offsets = [0, 64], sizes = [1, 32], strides = [1, 1]} : vector<1x128xf32> to vector<1x32xf32>
      %57 = vector.extract_strided_slice %53 {offsets = [0, 96], sizes = [1, 32], strides = [1, 1]} : vector<1x128xf32> to vector<1x32xf32>
      %cst_26 = arith.constant 2.000000e+00 : f32
      %58 = vector.broadcast %cst_26 : f32 to vector<1x32xf32>
      %59 = arith.mulf %58, %57 : vector<1x32xf32>
      %cst_27 = arith.constant 1.000000e+00 : f32
      %60 = vector.broadcast %cst_27 : f32 to vector<1x32xf32>
      %61 = arith.subf %59, %60 : vector<1x32xf32>
      %62 = arith.mulf %33, %55 : vector<1x32xf32>
      %63 = arith.mulf %54, %61 : vector<1x32xf32>
      %64 = arith.addf %62, %63 : vector<1x32xf32>
      %65 = math.tanh %64 : vector<1x32xf32>
      %66 = arith.mulf %56, %65 : vector<1x32xf32>
      %67 = arith.index_cast %42 : i32 to index
      %c0_28 = arith.constant 0 : index
      %68 = vector.load %arg5[%67, %c0_28] : memref<16x32xf32, #tpu.memory_space<vmem>>, vector<1x32xf32>
      tpu.vector_store %arg5[%67, %c0_28], %54 {strides = array<i32>} : memref<16x32xf32, #tpu.memory_space<vmem>>, vector<1x32xf32>,
      %69 = arith.index_cast %42 : i32 to index
      %c0_29 = arith.constant 0 : index
      %70 = vector.load %arg6[%69, %c0_29] : memref<16x32xf32, #tpu.memory_space<vmem>>, vector<1x32xf32>
      tpu.vector_store %arg6[%69, %c0_29], %55 {strides = array<i32>} : memref<16x32xf32, #tpu.memory_space<vmem>>, vector<1x32xf32>,
      %71 = arith.index_cast %42 : i32 to index
      %c0_30 = arith.constant 0 : index
      %72 = vector.load %arg7[%71, %c0_30] : memref<16x32xf32, #tpu.memory_space<vmem>>, vector<1x32xf32>
      tpu.vector_store %arg7[%71, %c0_30], %66 {strides = array<i32>} : memref<16x32xf32, #tpu.memory_space<vmem>>, vector<1x32xf32>,
      %c2_i32_31 = arith.constant 2 : i32
      %73 = arith.addi %10, %c2_i32_31 : i32
      %74 = arith.index_cast %73 : i32 to index
      %c0_32 = arith.constant 0 : index
      %75 = vector.load %arg1[%74, %c0_32] : memref<16x128xf32, #tpu.memory_space<vmem>>, vector<1x128xf32>
      %76 = arith.truncf %66 : vector<1x32xf32> to vector<1x32xbf16>
      %c0_33 = arith.constant 0 : index
      %c0_34 = arith.constant 0 : index
      %77 = vector.load %arg2[%c0_33, %c0_34] : memref<32x128xbf16, #tpu.memory_space<vmem>>, vector<32x128xbf16>
      %cst_35 = arith.constant dense<0.000000e+00> : vector<1x128xf32>
      %78 = tpu.matmul %76, %77, %cst_35 {dimension_numbers = #tpu.dot_dimension_numbers<[1], [0], [0], [1], [0, 0, 1, 1], [], []>} : vector<1x32xbf16>, vector<32x128xbf16>, vector<1x128xf32> -> vector<1x128xf32>
      %79 = arith.addf %75, %78 : vector<1x128xf32>
      %80 = arith.negf %79 : vector<1x128xf32>
      %81 = math.exp %80 : vector<1x128xf32>
      %cst_36 = arith.constant 1.000000e+00 : f32
      %82 = vector.broadcast %cst_36 : f32 to vector<1x128xf32>
      %83 = arith.addf %82, %81 : vector<1x128xf32>
      %84 = arith.divf %82, %83 : vector<1x128xf32>
      %85 = vector.extract_strided_slice %84 {offsets = [0, 0], sizes = [1, 32], strides = [1, 1]} : vector<1x128xf32> to vector<1x32xf32>
      %86 = vector.extract_strided_slice %84 {offsets = [0, 32], sizes = [1, 32], strides = [1, 1]} : vector<1x128xf32> to vector<1x32xf32>
      %87 = vector.extract_strided_slice %84 {offsets = [0, 64], sizes = [1, 32], strides = [1, 1]} : vector<1x128xf32> to vector<1x32xf32>
      %88 = vector.extract_strided_slice %84 {offsets = [0, 96], sizes = [1, 32], strides = [1, 1]} : vector<1x128xf32> to vector<1x32xf32>
      %cst_37 = arith.constant 2.000000e+00 : f32
      %89 = vector.broadcast %cst_37 : f32 to vector<1x32xf32>
      %90 = arith.mulf %89, %88 : vector<1x32xf32>
      %cst_38 = arith.constant 1.000000e+00 : f32
      %91 = vector.broadcast %cst_38 : f32 to vector<1x32xf32>
      %92 = arith.subf %90, %91 : vector<1x32xf32>
      %93 = arith.mulf %64, %86 : vector<1x32xf32>
      %94 = arith.mulf %85, %92 : vector<1x32xf32>
      %95 = arith.addf %93, %94 : vector<1x32xf32>
      %96 = math.tanh %95 : vector<1x32xf32>
      %97 = arith.mulf %87, %96 : vector<1x32xf32>
      %98 = arith.index_cast %73 : i32 to index
      %c0_39 = arith.constant 0 : index
      %99 = vector.load %arg5[%98, %c0_39] : memref<16x32xf32, #tpu.memory_space<vmem>>, vector<1x32xf32>
      tpu.vector_store %arg5[%98, %c0_39], %85 {strides = array<i32>} : memref<16x32xf32, #tpu.memory_space<vmem>>, vector<1x32xf32>,
      %100 = arith.index_cast %73 : i32 to index
      %c0_40 = arith.constant 0 : index
      %101 = vector.load %arg6[%100, %c0_40] : memref<16x32xf32, #tpu.memory_space<vmem>>, vector<1x32xf32>
      tpu.vector_store %arg6[%100, %c0_40], %86 {strides = array<i32>} : memref<16x32xf32, #tpu.memory_space<vmem>>, vector<1x32xf32>,
      %102 = arith.index_cast %73 : i32 to index
      %c0_41 = arith.constant 0 : index
      %103 = vector.load %arg7[%102, %c0_41] : memref<16x32xf32, #tpu.memory_space<vmem>>, vector<1x32xf32>
      tpu.vector_store %arg7[%102, %c0_41], %97 {strides = array<i32>} : memref<16x32xf32, #tpu.memory_space<vmem>>, vector<1x32xf32>,
      %c3_i32 = arith.constant 3 : i32
      %104 = arith.addi %10, %c3_i32 : i32
      %105 = arith.index_cast %104 : i32 to index
      %c0_42 = arith.constant 0 : index
      %106 = vector.load %arg1[%105, %c0_42] : memref<16x128xf32, #tpu.memory_space<vmem>>, vector<1x128xf32>
      %107 = arith.truncf %97 : vector<1x32xf32> to vector<1x32xbf16>
      %c0_43 = arith.constant 0 : index
      %c0_44 = arith.constant 0 : index
      %108 = vector.load %arg2[%c0_43, %c0_44] : memref<32x128xbf16, #tpu.memory_space<vmem>>, vector<32x128xbf16>
      %cst_45 = arith.constant dense<0.000000e+00> : vector<1x128xf32>
      %109 = tpu.matmul %107, %108, %cst_45 {dimension_numbers = #tpu.dot_dimension_numbers<[1], [0], [0], [1], [0, 0, 1, 1], [], []>} : vector<1x32xbf16>, vector<32x128xbf16>, vector<1x128xf32> -> vector<1x128xf32>
      %110 = arith.addf %106, %109 : vector<1x128xf32>
      %111 = arith.negf %110 : vector<1x128xf32>
      %112 = math.exp %111 : vector<1x128xf32>
      %cst_46 = arith.constant 1.000000e+00 : f32
      %113 = vector.broadcast %cst_46 : f32 to vector<1x128xf32>
      %114 = arith.addf %113, %112 : vector<1x128xf32>
      %115 = arith.divf %113, %114 : vector<1x128xf32>
      %116 = vector.extract_strided_slice %115 {offsets = [0, 0], sizes = [1, 32], strides = [1, 1]} : vector<1x128xf32> to vector<1x32xf32>
      %117 = vector.extract_strided_slice %115 {offsets = [0, 32], sizes = [1, 32], strides = [1, 1]} : vector<1x128xf32> to vector<1x32xf32>
      %118 = vector.extract_strided_slice %115 {offsets = [0, 64], sizes = [1, 32], strides = [1, 1]} : vector<1x128xf32> to vector<1x32xf32>
      %119 = vector.extract_strided_slice %115 {offsets = [0, 96], sizes = [1, 32], strides = [1, 1]} : vector<1x128xf32> to vector<1x32xf32>
      %cst_47 = arith.constant 2.000000e+00 : f32
      %120 = vector.broadcast %cst_47 : f32 to vector<1x32xf32>
      %121 = arith.mulf %120, %119 : vector<1x32xf32>
      %cst_48 = arith.constant 1.000000e+00 : f32
      %122 = vector.broadcast %cst_48 : f32 to vector<1x32xf32>
      %123 = arith.subf %121, %122 : vector<1x32xf32>
      %124 = arith.mulf %95, %117 : vector<1x32xf32>
      %125 = arith.mulf %116, %123 : vector<1x32xf32>
      %126 = arith.addf %124, %125 : vector<1x32xf32>
      %127 = math.tanh %126 : vector<1x32xf32>
      %128 = arith.mulf %118, %127 : vector<1x32xf32>
      %129 = arith.index_cast %104 : i32 to index
      %c0_49 = arith.constant 0 : index
      %130 = vector.load %arg5[%129, %c0_49] : memref<16x32xf32, #tpu.memory_space<vmem>>, vector<1x32xf32>
      tpu.vector_store %arg5[%129, %c0_49], %116 {strides = array<i32>} : memref<16x32xf32, #tpu.memory_space<vmem>>, vector<1x32xf32>,
      %131 = arith.index_cast %104 : i32 to index
      %c0_50 = arith.constant 0 : index
      %132 = vector.load %arg6[%131, %c0_50] : memref<16x32xf32, #tpu.memory_space<vmem>>, vector<1x32xf32>
      tpu.vector_store %arg6[%131, %c0_50], %117 {strides = array<i32>} : memref<16x32xf32, #tpu.memory_space<vmem>>, vector<1x32xf32>,
      %133 = arith.index_cast %104 : i32 to index
      %c0_51 = arith.constant 0 : index
      %134 = vector.load %arg7[%133, %c0_51] : memref<16x32xf32, #tpu.memory_space<vmem>>, vector<1x32xf32>
      tpu.vector_store %arg7[%133, %c0_51], %128 {strides = array<i32>} : memref<16x32xf32, #tpu.memory_space<vmem>>, vector<1x32xf32>,
      %c4_i32 = arith.constant 4 : i32
      %135 = arith.addi %10, %c4_i32 : i32
      %136 = arith.index_cast %135 : i32 to index
      %c0_52 = arith.constant 0 : index
      %137 = vector.load %arg1[%136, %c0_52] : memref<16x128xf32, #tpu.memory_space<vmem>>, vector<1x128xf32>
      %138 = arith.truncf %128 : vector<1x32xf32> to vector<1x32xbf16>
      %c0_53 = arith.constant 0 : index
      %c0_54 = arith.constant 0 : index
      %139 = vector.load %arg2[%c0_53, %c0_54] : memref<32x128xbf16, #tpu.memory_space<vmem>>, vector<32x128xbf16>
      %cst_55 = arith.constant dense<0.000000e+00> : vector<1x128xf32>
      %140 = tpu.matmul %138, %139, %cst_55 {dimension_numbers = #tpu.dot_dimension_numbers<[1], [0], [0], [1], [0, 0, 1, 1], [], []>} : vector<1x32xbf16>, vector<32x128xbf16>, vector<1x128xf32> -> vector<1x128xf32>
      %141 = arith.addf %137, %140 : vector<1x128xf32>
      %142 = arith.negf %141 : vector<1x128xf32>
      %143 = math.exp %142 : vector<1x128xf32>
      %cst_56 = arith.constant 1.000000e+00 : f32
      %144 = vector.broadcast %cst_56 : f32 to vector<1x128xf32>
      %145 = arith.addf %144, %143 : vector<1x128xf32>
      %146 = arith.divf %144, %145 : vector<1x128xf32>
      %147 = vector.extract_strided_slice %146 {offsets = [0, 0], sizes = [1, 32], strides = [1, 1]} : vector<1x128xf32> to vector<1x32xf32>
      %148 = vector.extract_strided_slice %146 {offsets = [0, 32], sizes = [1, 32], strides = [1, 1]} : vector<1x128xf32> to vector<1x32xf32>
      %149 = vector.extract_strided_slice %146 {offsets = [0, 64], sizes = [1, 32], strides = [1, 1]} : vector<1x128xf32> to vector<1x32xf32>
      %150 = vector.extract_strided_slice %146 {offsets = [0, 96], sizes = [1, 32], strides = [1, 1]} : vector<1x128xf32> to vector<1x32xf32>
      %cst_57 = arith.constant 2.000000e+00 : f32
      %151 = vector.broadcast %cst_57 : f32 to vector<1x32xf32>
      %152 = arith.mulf %151, %150 : vector<1x32xf32>
      %cst_58 = arith.constant 1.000000e+00 : f32
      %153 = vector.broadcast %cst_58 : f32 to vector<1x32xf32>
      %154 = arith.subf %152, %153 : vector<1x32xf32>
      %155 = arith.mulf %126, %148 : vector<1x32xf32>
      %156 = arith.mulf %147, %154 : vector<1x32xf32>
      %157 = arith.addf %155, %156 : vector<1x32xf32>
      %158 = math.tanh %157 : vector<1x32xf32>
      %159 = arith.mulf %149, %158 : vector<1x32xf32>
      %160 = arith.index_cast %135 : i32 to index
      %c0_59 = arith.constant 0 : index
      %161 = vector.load %arg5[%160, %c0_59] : memref<16x32xf32, #tpu.memory_space<vmem>>, vector<1x32xf32>
      tpu.vector_store %arg5[%160, %c0_59], %147 {strides = array<i32>} : memref<16x32xf32, #tpu.memory_space<vmem>>, vector<1x32xf32>,
      %162 = arith.index_cast %135 : i32 to index
      %c0_60 = arith.constant 0 : index
      %163 = vector.load %arg6[%162, %c0_60] : memref<16x32xf32, #tpu.memory_space<vmem>>, vector<1x32xf32>
      tpu.vector_store %arg6[%162, %c0_60], %148 {strides = array<i32>} : memref<16x32xf32, #tpu.memory_space<vmem>>, vector<1x32xf32>,
      %164 = arith.index_cast %135 : i32 to index
      %c0_61 = arith.constant 0 : index
      %165 = vector.load %arg7[%164, %c0_61] : memref<16x32xf32, #tpu.memory_space<vmem>>, vector<1x32xf32>
      tpu.vector_store %arg7[%164, %c0_61], %159 {strides = array<i32>} : memref<16x32xf32, #tpu.memory_space<vmem>>, vector<1x32xf32>,
      %c5_i32 = arith.constant 5 : i32
      %166 = arith.addi %10, %c5_i32 : i32
      %167 = arith.index_cast %166 : i32 to index
      %c0_62 = arith.constant 0 : index
      %168 = vector.load %arg1[%167, %c0_62] : memref<16x128xf32, #tpu.memory_space<vmem>>, vector<1x128xf32>
      %169 = arith.truncf %159 : vector<1x32xf32> to vector<1x32xbf16>
      %c0_63 = arith.constant 0 : index
      %c0_64 = arith.constant 0 : index
      %170 = vector.load %arg2[%c0_63, %c0_64] : memref<32x128xbf16, #tpu.memory_space<vmem>>, vector<32x128xbf16>
      %cst_65 = arith.constant dense<0.000000e+00> : vector<1x128xf32>
      %171 = tpu.matmul %169, %170, %cst_65 {dimension_numbers = #tpu.dot_dimension_numbers<[1], [0], [0], [1], [0, 0, 1, 1], [], []>} : vector<1x32xbf16>, vector<32x128xbf16>, vector<1x128xf32> -> vector<1x128xf32>
      %172 = arith.addf %168, %171 : vector<1x128xf32>
      %173 = arith.negf %172 : vector<1x128xf32>
      %174 = math.exp %173 : vector<1x128xf32>
      %cst_66 = arith.constant 1.000000e+00 : f32
      %175 = vector.broadcast %cst_66 : f32 to vector<1x128xf32>
      %176 = arith.addf %175, %174 : vector<1x128xf32>
      %177 = arith.divf %175, %176 : vector<1x128xf32>
      %178 = vector.extract_strided_slice %177 {offsets = [0, 0], sizes = [1, 32], strides = [1, 1]} : vector<1x128xf32> to vector<1x32xf32>
      %179 = vector.extract_strided_slice %177 {offsets = [0, 32], sizes = [1, 32], strides = [1, 1]} : vector<1x128xf32> to vector<1x32xf32>
      %180 = vector.extract_strided_slice %177 {offsets = [0, 64], sizes = [1, 32], strides = [1, 1]} : vector<1x128xf32> to vector<1x32xf32>
      %181 = vector.extract_strided_slice %177 {offsets = [0, 96], sizes = [1, 32], strides = [1, 1]} : vector<1x128xf32> to vector<1x32xf32>
      %cst_67 = arith.constant 2.000000e+00 : f32
      %182 = vector.broadcast %cst_67 : f32 to vector<1x32xf32>
      %183 = arith.mulf %182, %181 : vector<1x32xf32>
      %cst_68 = arith.constant 1.000000e+00 : f32
      %184 = vector.broadcast %cst_68 : f32 to vector<1x32xf32>
      %185 = arith.subf %183, %184 : vector<1x32xf32>
      %186 = arith.mulf %157, %179 : vector<1x32xf32>
      %187 = arith.mulf %178, %185 : vector<1x32xf32>
      %188 = arith.addf %186, %187 : vector<1x32xf32>
      %189 = math.tanh %188 : vector<1x32xf32>
      %190 = arith.mulf %180, %189 : vector<1x32xf32>
      %191 = arith.index_cast %166 : i32 to index
      %c0_69 = arith.constant 0 : index
      %192 = vector.load %arg5[%191, %c0_69] : memref<16x32xf32, #tpu.memory_space<vmem>>, vector<1x32xf32>
      tpu.vector_store %arg5[%191, %c0_69], %178 {strides = array<i32>} : memref<16x32xf32, #tpu.memory_space<vmem>>, vector<1x32xf32>,
      %193 = arith.index_cast %166 : i32 to index
      %c0_70 = arith.constant 0 : index
      %194 = vector.load %arg6[%193, %c0_70] : memref<16x32xf32, #tpu.memory_space<vmem>>, vector<1x32xf32>
      tpu.vector_store %arg6[%193, %c0_70], %179 {strides = array<i32>} : memref<16x32xf32, #tpu.memory_space<vmem>>, vector<1x32xf32>,
      %195 = arith.index_cast %166 : i32 to index
      %c0_71 = arith.constant 0 : index
      %196 = vector.load %arg7[%195, %c0_71] : memref<16x32xf32, #tpu.memory_space<vmem>>, vector<1x32xf32>
      tpu.vector_store %arg7[%195, %c0_71], %190 {strides = array<i32>} : memref<16x32xf32, #tpu.memory_space<vmem>>, vector<1x32xf32>,
      %c6_i32 = arith.constant 6 : i32
      %197 = arith.addi %10, %c6_i32 : i32
      %198 = arith.index_cast %197 : i32 to index
      %c0_72 = arith.constant 0 : index
      %199 = vector.load %arg1[%198, %c0_72] : memref<16x128xf32, #tpu.memory_space<vmem>>, vector<1x128xf32>
      %200 = arith.truncf %190 : vector<1x32xf32> to vector<1x32xbf16>
      %c0_73 = arith.constant 0 : index
      %c0_74 = arith.constant 0 : index
      %201 = vector.load %arg2[%c0_73, %c0_74] : memref<32x128xbf16, #tpu.memory_space<vmem>>, vector<32x128xbf16>
      %cst_75 = arith.constant dense<0.000000e+00> : vector<1x128xf32>
      %202 = tpu.matmul %200, %201, %cst_75 {dimension_numbers = #tpu.dot_dimension_numbers<[1], [0], [0], [1], [0, 0, 1, 1], [], []>} : vector<1x32xbf16>, vector<32x128xbf16>, vector<1x128xf32> -> vector<1x128xf32>
      %203 = arith.addf %199, %202 : vector<1x128xf32>
      %204 = arith.negf %203 : vector<1x128xf32>
      %205 = math.exp %204 : vector<1x128xf32>
      %cst_76 = arith.constant 1.000000e+00 : f32
      %206 = vector.broadcast %cst_76 : f32 to vector<1x128xf32>
      %207 = arith.addf %206, %205 : vector<1x128xf32>
      %208 = arith.divf %206, %207 : vector<1x128xf32>
      %209 = vector.extract_strided_slice %208 {offsets = [0, 0], sizes = [1, 32], strides = [1, 1]} : vector<1x128xf32> to vector<1x32xf32>
      %210 = vector.extract_strided_slice %208 {offsets = [0, 32], sizes = [1, 32], strides = [1, 1]} : vector<1x128xf32> to vector<1x32xf32>
      %211 = vector.extract_strided_slice %208 {offsets = [0, 64], sizes = [1, 32], strides = [1, 1]} : vector<1x128xf32> to vector<1x32xf32>
      %212 = vector.extract_strided_slice %208 {offsets = [0, 96], sizes = [1, 32], strides = [1, 1]} : vector<1x128xf32> to vector<1x32xf32>
      %cst_77 = arith.constant 2.000000e+00 : f32
      %213 = vector.broadcast %cst_77 : f32 to vector<1x32xf32>
      %214 = arith.mulf %213, %212 : vector<1x32xf32>
      %cst_78 = arith.constant 1.000000e+00 : f32
      %215 = vector.broadcast %cst_78 : f32 to vector<1x32xf32>
      %216 = arith.subf %214, %215 : vector<1x32xf32>
      %217 = arith.mulf %188, %210 : vector<1x32xf32>
      %218 = arith.mulf %209, %216 : vector<1x32xf32>
      %219 = arith.addf %217, %218 : vector<1x32xf32>
      %220 = math.tanh %219 : vector<1x32xf32>
      %221 = arith.mulf %211, %220 : vector<1x32xf32>
      %222 = arith.index_cast %197 : i32 to index
      %c0_79 = arith.constant 0 : index
      %223 = vector.load %arg5[%222, %c0_79] : memref<16x32xf32, #tpu.memory_space<vmem>>, vector<1x32xf32>
      tpu.vector_store %arg5[%222, %c0_79], %209 {strides = array<i32>} : memref<16x32xf32, #tpu.memory_space<vmem>>, vector<1x32xf32>,
      %224 = arith.index_cast %197 : i32 to index
      %c0_80 = arith.constant 0 : index
      %225 = vector.load %arg6[%224, %c0_80] : memref<16x32xf32, #tpu.memory_space<vmem>>, vector<1x32xf32>
      tpu.vector_store %arg6[%224, %c0_80], %210 {strides = array<i32>} : memref<16x32xf32, #tpu.memory_space<vmem>>, vector<1x32xf32>,
      %226 = arith.index_cast %197 : i32 to index
      %c0_81 = arith.constant 0 : index
      %227 = vector.load %arg7[%226, %c0_81] : memref<16x32xf32, #tpu.memory_space<vmem>>, vector<1x32xf32>
      tpu.vector_store %arg7[%226, %c0_81], %221 {strides = array<i32>} : memref<16x32xf32, #tpu.memory_space<vmem>>, vector<1x32xf32>,
      %c7_i32 = arith.constant 7 : i32
      %228 = arith.addi %10, %c7_i32 : i32
      %229 = arith.index_cast %228 : i32 to index
      %c0_82 = arith.constant 0 : index
      %230 = vector.load %arg1[%229, %c0_82] : memref<16x128xf32, #tpu.memory_space<vmem>>, vector<1x128xf32>
      %231 = arith.truncf %221 : vector<1x32xf32> to vector<1x32xbf16>
      %c0_83 = arith.constant 0 : index
      %c0_84 = arith.constant 0 : index
      %232 = vector.load %arg2[%c0_83, %c0_84] : memref<32x128xbf16, #tpu.memory_space<vmem>>, vector<32x128xbf16>
      %cst_85 = arith.constant dense<0.000000e+00> : vector<1x128xf32>
      %233 = tpu.matmul %231, %232, %cst_85 {dimension_numbers = #tpu.dot_dimension_numbers<[1], [0], [0], [1], [0, 0, 1, 1], [], []>} : vector<1x32xbf16>, vector<32x128xbf16>, vector<1x128xf32> -> vector<1x128xf32>
      %234 = arith.addf %230, %233 : vector<1x128xf32>
      %235 = arith.negf %234 : vector<1x128xf32>
      %236 = math.exp %235 : vector<1x128xf32>
      %cst_86 = arith.constant 1.000000e+00 : f32
      %237 = vector.broadcast %cst_86 : f32 to vector<1x128xf32>
      %238 = arith.addf %237, %236 : vector<1x128xf32>
      %239 = arith.divf %237, %238 : vector<1x128xf32>
      %240 = vector.extract_strided_slice %239 {offsets = [0, 0], sizes = [1, 32], strides = [1, 1]} : vector<1x128xf32> to vector<1x32xf32>
      %241 = vector.extract_strided_slice %239 {offsets = [0, 32], sizes = [1, 32], strides = [1, 1]} : vector<1x128xf32> to vector<1x32xf32>
      %242 = vector.extract_strided_slice %239 {offsets = [0, 64], sizes = [1, 32], strides = [1, 1]} : vector<1x128xf32> to vector<1x32xf32>
      %243 = vector.extract_strided_slice %239 {offsets = [0, 96], sizes = [1, 32], strides = [1, 1]} : vector<1x128xf32> to vector<1x32xf32>
      %cst_87 = arith.constant 2.000000e+00 : f32
      %244 = vector.broadcast %cst_87 : f32 to vector<1x32xf32>
      %245 = arith.mulf %244, %243 : vector<1x32xf32>
      %cst_88 = arith.constant 1.000000e+00 : f32
      %246 = vector.broadcast %cst_88 : f32 to vector<1x32xf32>
      %247 = arith.subf %245, %246 : vector<1x32xf32>
      %248 = arith.mulf %219, %241 : vector<1x32xf32>
      %249 = arith.mulf %240, %247 : vector<1x32xf32>
      %250 = arith.addf %248, %249 : vector<1x32xf32>
      %251 = math.tanh %250 : vector<1x32xf32>
      %252 = arith.mulf %242, %251 : vector<1x32xf32>
      %253 = arith.index_cast %228 : i32 to index
      %c0_89 = arith.constant 0 : index
      %254 = vector.load %arg5[%253, %c0_89] : memref<16x32xf32, #tpu.memory_space<vmem>>, vector<1x32xf32>
      tpu.vector_store %arg5[%253, %c0_89], %240 {strides = array<i32>} : memref<16x32xf32, #tpu.memory_space<vmem>>, vector<1x32xf32>,
      %255 = arith.index_cast %228 : i32 to index
      %c0_90 = arith.constant 0 : index
      %256 = vector.load %arg6[%255, %c0_90] : memref<16x32xf32, #tpu.memory_space<vmem>>, vector<1x32xf32>
      tpu.vector_store %arg6[%255, %c0_90], %241 {strides = array<i32>} : memref<16x32xf32, #tpu.memory_space<vmem>>, vector<1x32xf32>,
      %257 = arith.index_cast %228 : i32 to index
      %c0_91 = arith.constant 0 : index
      %258 = vector.load %arg7[%257, %c0_91] : memref<16x32xf32, #tpu.memory_space<vmem>>, vector<1x32xf32>
      tpu.vector_store %arg7[%257, %c0_91], %252 {strides = array<i32>} : memref<16x32xf32, #tpu.memory_space<vmem>>, vector<1x32xf32>,
      scf.yield %252, %250 : vector<1x32xf32>, vector<1x32xf32>
    }
    %c2_i32_5 = arith.constant 2 : i32
    %c0_6 = arith.constant 0 : index
    %c0_7 = arith.constant 0 : index
    %7 = vector.load %arg8[%c0_6, %c0_7] : memref<1x32xf32, #tpu.memory_space<vmem>>, vector<1x32xf32>
    tpu.vector_store %arg8[%c0_6, %c0_7], %6#0 {strides = array<i32>} : memref<1x32xf32, #tpu.memory_space<vmem>>, vector<1x32xf32>,
    %c0_8 = arith.constant 0 : index
    %c0_9 = arith.constant 0 : index
    %8 = vector.load %arg9[%c0_8, %c0_9] : memref<1x32xf32, #tpu.memory_space<vmem>>, vector<1x32xf32>
    tpu.vector_store %arg9[%c0_8, %c0_9], %6#1 {strides = array<i32>} : memref<1x32xf32, #tpu.memory_space<vmem>>, vector<1x32xf32>,
    return
  }
  func.func @transform_0(%arg0: i32) -> (i32, i32) {
    %c0_i32 = arith.constant 0 : i32
    %c0_i32_0 = arith.constant 0 : i32
    return %arg0, %c0_i32 : i32, i32
  }
  func.func @transform_1(%arg0: i32) -> (i32, i32) {
    %c0_i32 = arith.constant 0 : i32
    %c0_i32_0 = arith.constant 0 : i32
    %c0_i32_1 = arith.constant 0 : i32
    return %c0_i32, %c0_i32_0 : i32, i32
  }
  func.func @transform_2(%arg0: i32) -> (i32, i32) {
    %c0_i32 = arith.constant 0 : i32
    %c0_i32_0 = arith.constant 0 : i32
    %c0_i32_1 = arith.constant 0 : i32
    return %c0_i32, %c0_i32_0 : i32, i32
  }
  func.func @transform_3(%arg0: i32) -> (i32, i32) {
    %c0_i32 = arith.constant 0 : i32
    %c0_i32_0 = arith.constant 0 : i32
    %c0_i32_1 = arith.constant 0 : i32
    return %c0_i32, %c0_i32_0 : i32, i32
  }
  func.func @transform_4(%arg0: i32) -> (i32, i32) {
    %c0_i32 = arith.constant 0 : i32
    %c0_i32_0 = arith.constant 0 : i32
    return %arg0, %c0_i32 : i32, i32
  }
  func.func @transform_5(%arg0: i32) -> (i32, i32) {
    %c0_i32 = arith.constant 0 : i32
    %c0_i32_0 = arith.constant 0 : i32
    return %arg0, %c0_i32 : i32, i32
  }
  func.func @transform_6(%arg0: i32) -> (i32, i32) {
    %c0_i32 = arith.constant 0 : i32
    %c0_i32_0 = arith.constant 0 : i32
    return %arg0, %c0_i32 : i32, i32
  }
}

</mosaic_0001>

<bundles_post_ra>
// kernel: tpu_custom_call.1
= control target key start
LH: loop header
LB: loop body
LE: loop exit
PB: predicated region body
PF: predicated region fallthrough
CT: control target
= control target key end

     0   :  { %12 = vsyncpa [#allocation5], 0  ;;  %s1982_s0 = inlined_call_operand.hbm [shape: f32[16,128], index: 0, kind: input, shape index: {}]   ;;  %s1983_s1 = inlined_call_operand.hbm [shape: bf16[32,128], index: 1, kind: input, shape index: {}]   ;;  %s1984_s2 = inlined_call_operand.vmem [shape: f32[1,32], index: 2, kind: input, shape index: {}]   ;;  %s1985_s3 = inlined_call_operand.vmem [shape: f32[1,32], index: 3, kind: input, shape index: {}]   ;;  %s1986_s4 = inlined_call_operand.hbm [shape: f32[16,32], index: 4, kind: output, shape index: {0}]   ;;  %s1987_s5 = inlined_call_operand.hbm [shape: f32[16,32], index: 5, kind: output, shape index: {1}]   ;;  %s1988_s6 = inlined_call_operand.hbm [shape: f32[16,32], index: 6, kind: output, shape index: {2}]  }
   0x1   :  { %13 = vsyncpa [#allocation8], 0 }
   0x2   :  { %14 = vsyncpa [#allocation6], 0 }
   0x3   :  { %15 = vsyncpa [#allocation11], 0  ;;  %s1628_s21 = smov [#allocation4]  }
   0x4   :  { %s21_s22 = sshll.u32 %s1628_s21, 4  ;;  %s22_s22 = int_to_ptr.vmem [resolvable:$true] %s21_s22 }
   0x5   :  { %s1504_s23 = scalar_lea.vmem %s22_s22, 256  ;;  %p1509_p1 = scmp.lt.s32.totalorder %s22_s22, %s22_s22 }
   0x6   :  { %p1505_p0 = scmp.ne.s32.totalorder %s22_s22, %s1504_s23  ;;  %p1510_p2 = scmp.lt.s32.totalorder %s1504_s23, %s1504_s23 }
   0x8   :  { %p1511_p3 = por %p1510_p2, %p1509_p1 }
   0xa   :  { %p1512_p4 = pnand %p1511_p3, %p1505_p0 }
   0xc   :  { %1515 = shalt.err (!%p1512_p4)
}
   0xd   :  { %s1629_s24 = smov 128   ;;  %s1630_s25 = smov 8  }
   0xe   :  { %27 = dma.hbm_to_vmem [thread:$0]  %s1982_s0, 256, %s22_s22, [#allocation5], %s1629_s24, %s1629_s24, %s1630_s25  }
   0xf   :  { %s1631_s28 = smov [#allocation7]  }
  0x10   :  { %s33_s29 = sshll.u32 %s1631_s28, 4  ;;  %s34_s29 = int_to_ptr.vmem [resolvable:$true] %s33_s29 }
  0x11   :  { %s1524_s30 = scalar_lea.vmem %s34_s29, 256  ;;  %p1529_p6 = scmp.lt.s32.totalorder %s34_s29, %s34_s29 }
  0x12   :  { %p1525_p5 = scmp.ne.s32.totalorder %s34_s29, %s1524_s30  ;;  %p1530_p7 = scmp.lt.s32.totalorder %s1524_s30, %s1524_s30 }
  0x14   :  { %p1531_p8 = por %p1530_p7, %p1529_p6 }
  0x16   :  { %p1532_p9 = pnand %p1531_p8, %p1525_p5 }
  0x18   :  { %1535 = shalt.err (!%p1532_p9)
}
  0x19   :  { %s1632_s7 = smov 64   ;;  %s1633_s8 = smov 4  }
  0x1a   :  { %39 = dma.hbm_to_vmem [thread:$0]  %s1983_s1, 256, %s34_s29, [#allocation8], %s1632_s7, %s1632_s7, %s1633_s8  }
  0x1b   :  { %1608 = dma.done.wait [#allocation5], 256  }
  0x1c   :  { %1609 = vsyncadd [#allocation5], 4294967040 }
  0x1d   :  { %1610 = dma.done.wait [#allocation8], 256  }
  0x1e   :  { %1611 = vsyncadd [#allocation8], 4294967040  ;;  %vm56_vm0 = vcmask 253952   ;;  %v55_v0 = vld [vmem:[%s1984_s2] sm:$0x1]  ;;  %s1699_s1 = smov 0  }
  0x1f   :  { %v58_v1 = vld [vmem:[%s1985_s3] sm:$0x1]  ;;  %57 = vst.msk [vmem:[#allocation2] sm:$0x1] %vm56_vm0, %v55_v0 }
  0x20   :  { %59 = vst.msk [vmem:[#allocation3] sm:$0x1] %vm56_vm0, %v58_v1 }
  0x26   :  { %v60_v2 = vld [vmem:[#allocation2] sm:$0x1]  }
  0x27   :  { %v61_v3 = vld [vmem:[#allocation3] sm:$0x1]  }
  0x28 LB: > { %v1432_v4 = vld [vmem:[#allocation7 + $0x8] sm:$0xff]   ;;  %v1634_v5 = vmov 0.0   ;;  %v1433_v6 = vld [vmem:[#allocation7] sm:$0xff]   ;;  %vm1635_vm1 = vmmov 0   ;;  %vm90_vm2 = vcmask 261120   ;;  %v73_v7 = vpack.c.bf16 %v1622_v2, %v1622_v2  ;;  %s1718_s2 = sshll.u32 %s1626_s1, 3  ;;  %s1626_s1 = sphi %s1699_s1, %s67_s1   ;;  %v1622_v2 = vphi %v60_v2, %v1990_v2   ;;  %v1618_v3 = vphi %v61_v3, %v1989_v3  }
  0x29   : > { %1329 = vmatprep.subr.bf16.mxu0 %v1634_v5  ;;  %1337 = vmatprep.subr.bf16.mxu1 %v1634_v5  ;;  %s1721_s3 = scalar_lea.vmem [#allocation4], %s1718_s2  ;;  %v1636_v17 = vmov 1966171168   ;;  %v147_v19 = vlaneseq  ;;  %s1729_s14 = scalar_lea.vmem [#allocation9], %s1718_s2  ;;  %v1434_v33 = vld [vmem:[#allocation7 + $0x8] sm:$0xff]   ;;  %v1435_v34 = vld [vmem:[#allocation7] sm:$0xff]  }
  0x2a   : > { %1330 = vmatpush3.bf16.msra.mxu0 %v1432_v4  ;;  %1333 = vmatprep.mubr.msk.bf16.mxu0 %vm1635_vm1, %v1634_v5  ;;  %v72_v8 = vld [vmem:[%s1721_s3] sm:$0x1]  ;;  %v145_v18 = vunpack.c.l.s4 %v1636_v17  ;;  %s1637_s15 = smov 96   ;;  %s1638_s16 = smov 32   ;;  %v1215_v42 = vld [vmem:[%s1721_s3 + $0x1] sm:$0x1] }
  0x2b   : > { %1331 = vmatprep.subr.bf16.mxu0 %v1634_v5  ;;  %1341 = vmatprep.mubr.msk.bf16.mxu1 %vm1635_vm1, %v1634_v5  ;;  %v148_v21 = vshrl.u32 %v147_v19, 7  ;;  %s1639_s17 = smov 64   ;;  %v1436_v61 = vld [vmem:[#allocation7 + $0x8] sm:$0xff]   ;;  %v1437_v62 = vld [vmem:[#allocation7] sm:$0xff]   ;;  %s184_s18 = scalar_lea.vmem [#allocation10], %s1718_s2 }
  0x2c   : > { %v146_v20 = vunpack.c.0.s8 %v145_v18  ;;  %1338 = vmatpush3.bf16.msra.mxu1 %v1434_v33  ;;  %s190_s19 = scalar_lea.vmem [#allocation12], %s1718_s2  ;;  %s67_s1 = sadd.s32 1, %s1626_s1  }
  0x2d   : > { %v1741_v35 = vsub.s32 0, %v148_v21  ;;  %1339 = vmatprep.subr.bf16.mxu1 %v1634_v5  ;;  %p64_p10 = scmp.ge.s32.totalorder %s67_s1, 2  }
  0x2e   : > { %1332 = vmatpush3.bf16.msra.mxu0 %v1433_v6  ;;  %v1724_v22 = vsub.s32 %v146_v20, %v148_v21  ;;  %v1228_v6 = vld [vmem:[%s1721_s3 + $0x2] sm:$0x1]  ;;  %s1640_s20 = smov (%p64_p10), [#allocation10]   ;;  %s1641_s22 = smov (%p64_p10), [#allocation9]  }
  0x2f   : > { %1345 = vmatprep.subr.bf16.mxu0 %v1634_v5  ;;  %s1073_s21 = sshll.u32 (%p64_p10), %s1640_s20, 4  ;;  %s1061_s23 = sshll.u32 (%p64_p10), %s1641_s22, 4  ;;  %s1074_s21 = int_to_ptr.vmem [resolvable:$true] %s1073_s21  ;;  %s1062_s23 = int_to_ptr.vmem [resolvable:$true] %s1061_s23 }
  0x30   : > { %1340 = vmatpush3.bf16.msra.mxu1 %v1435_v34  ;;  %s1536_s26 = scalar_lea.vmem (%p64_p10), %s1074_s21, 256  ;;  %p1541_p12 = scmp.lt.s32.totalorder (%p64_p10), %s1074_s21, %s1074_s21 }
  0x31   : > { %1334 = vmatmul.mubr.msk.bf16.vlgmr.msra.gmra.mxu0 %vm90_vm2, %v73_v7  ;;  %1353 = vmatprep.subr.bf16.mxu1 %v1634_v5  ;;  %p1537_p11 = scmp.ne.s32.totalorder (%p64_p10), %s1074_s21, %s1536_s26  ;;  %p1542_p13 = scmp.lt.s32.totalorder (%p64_p10), %s1536_s26, %s1536_s26 }
  0x32   : > { %1349 = vmatprep.mubr.msk.bf16.mxu0 %vm1635_vm1, %v1634_v5  ;;  %1346 = vmatpush3.bf16.msra.mxu0 %v1436_v61 }
  0x33   : > { %1347 = vmatprep.subr.bf16.mxu0 %v1634_v5  ;;  %p1543_p0 = por (%p64_p10), %p1542_p13, %p1541_p12 }
  0x35   :  { %p1544_p1 = pnand (%p64_p10), %p1543_p0, %p1537_p11 }
  0x36   : > { %1348 = vmatpush3.bf16.msra.mxu0 %v1437_v62 }
  0x37   : > { %1361 = vmatprep.subr.bf16.mxu0 %v1634_v5 }
  0xf1   : > { %v128_v9 = vpop.f32.mrf.mxu0 }
  0xf2   : > { %v134_v10 = vadd.f32 %v128_v9, %v72_v8 }
  0xf3   : > { %v1335_v11 = vpop.f32.mrf.mxu0 }
  0xf4   : > { %v1212_v12 = vmul.f32 -1.442695, %v134_v10 }
  0xf5   : > { %v131_v13 = vpop.f32.mrf.mxu0 }
  0xf6   : > { %1448 = vpow2.f32 %v1212_v12 }
  0xf7   : > { %v1336_v14 = vpop.f32.mrf.mxu0 }
 0x103   : > { %v1449_v15 = vpop.eup %1448 }
 0x104   : > { %v138_v16 = vadd.f32 1.0, %v1449_v15 }
 0x106   : > { %1450 = vrcp.f32 %v138_v16 }
 0x113   : > { %v1726_v23 = vpop.eup %1450 }
 0x114   : > { %180 = vst.msk [vmem:[%s1729_s14] sm:$0x1] %vm56_vm0, %v1726_v23  ;;  %v150_v24 = vrot.slane %v1726_v23, %v1724_v22  ;;  %v141_v26 = vmul.f32 2.0, %v1726_v23 }
 0x116   : > { %v157_v25 = vrot.slane %v150_v24, %v1724_v22  ;;  %v1213_v27 = vadd.f32 -1.0, %v141_v26 }
 0x118   : > { %158 = vrot.lane.b32.xlu0 %v157_v25, %s1637_s15 }
 0x11c   : > { %163 = vrot.lane.b32.xlu0 %v1213_v27, %s1638_s16  ;;  %v1438_v27 = vld [vmem:[#allocation7 + $0x8] sm:$0xff]  }
 0x18a   : > { %v159_v28 = vpop.permute.xlu0 %158 }
 0x18b   : > { %v161_v30 = vmul.f32 %v1618_v3, %v159_v28  ;;  %v1439_v28 = vld [vmem:[#allocation7] sm:$0xff]  }
 0x18e   : > { %v164_v29 = vpop.permute.xlu0 %163 }
 0x18f   : > { %v166_v31 = vmul.f32 %v1726_v23, %v164_v29 }
 0x191   : > { %v167_v32 = vadd.f32 %v166_v31, %v161_v30 }
 0x193   : > { %1452 = vtanh.f32 %v167_v32 }
 0x1a0   : > { %v1453_v36 = vpop.eup %1452 }
 0x1a1   : > { %v173_v37 = vrot.slane %v1453_v36, %v1741_v35  ;;  %v1241_v36 = vld [vmem:[%s1721_s3 + $0x3] sm:$0x1] }
 0x1a3   : > { %174 = vrot.lane.b32.xlu1 %v173_v37, %s1639_s17 }
 0x215   : > { %v175_v38 = vpop.permute.xlu1 %174 }
 0x216   : > { %v1748_v39 = vmul.f32 %v1726_v23, %v175_v38 }
 0x218   : > { %v195_v40 = vpack.c.bf16 %v1748_v39, %v1748_v39 }
 0x21a   : > { %201 = vrot.lane.b32.xlu1 %v195_v40, %s1639_s17 }
 0x28c   : > { %v202_v41 = vpop.permute.xlu1 %201 }
 0x28d   : > { %1342 = vmatmul.mubr.msk.bf16.vlgmr.msra.gmra.mxu1 %vm90_vm2, %v202_v41 }
 0x28e   : > { %1357 = vmatprep.mubr.msk.bf16.mxu1 %vm1635_vm1, %v1634_v5  ;;  %1354 = vmatpush3.bf16.msra.mxu1 %v1438_v27 }
 0x28f   : > { %1355 = vmatprep.subr.bf16.mxu1 %v1634_v5 }
 0x292   : > { %1356 = vmatpush3.bf16.msra.mxu1 %v1439_v28 }
 0x293   : > { %1369 = vmatprep.subr.bf16.mxu1 %v1634_v5 }
 0x34d   : > { %v252_v43 = vpop.f32.mrf.mxu1 }
 0x34e   : > { %v258_v44 = vadd.f32 %v1215_v42, %v252_v43 }
 0x34f   : > { %v1343_v45 = vpop.f32.mrf.mxu1 }
 0x350   : > { %v1219_v46 = vmul.f32 -1.442695, %v258_v44 }
 0x351   : > { %v255_v47 = vpop.f32.mrf.mxu1 }
 0x352   : > { %1454 = vpow2.f32 %v1219_v46 }
 0x353   : > { %v1344_v48 = vpop.f32.mrf.mxu1 }
 0x35f   : > { %v1455_v49 = vpop.eup %1454 }
 0x360   : > { %v262_v50 = vadd.f32 1.0, %v1455_v49 }
 0x362   : > { %1456 = vrcp.f32 %v262_v50 }
 0x36f   : > { %v1757_v51 = vpop.eup %1456 }
 0x370   : > { %1222 = vst.msk [vmem:[%s1729_s14 + $0x1] sm:$0x1] %vm56_vm0, %v1757_v51  ;;  %v274_v52 = vrot.slane %v1757_v51, %v1724_v22  ;;  %v265_v53 = vmul.f32 2.0, %v1757_v51 }
 0x372   : > { %v281_v54 = vrot.slane %v274_v52, %v1724_v22  ;;  %v1220_v55 = vadd.f32 -1.0, %v265_v53 }
 0x374   : > { %282 = vrot.lane.b32.xlu0 %v281_v54, %s1637_s15  ;;  %287 = vrot.lane.b32.xlu1 %v1220_v55, %s1638_s16 }
 0x3e6   : > { %v283_v56 = vpop.permute.xlu0 %282  ;;  %v288_v57 = vpop.permute.xlu1 %287 }
 0x3e7   : > { %v285_v58 = vmul.f32 %v283_v56, %v167_v32  ;;  %v290_v59 = vmul.f32 %v1757_v51, %v288_v57  ;;  %v1440_v57 = vld [vmem:[#allocation7 + $0x8] sm:$0xff]  }
 0x3e9   : > { %v291_v60 = vadd.f32 %v290_v59, %v285_v58  ;;  %v1441_v58 = vld [vmem:[#allocation7] sm:$0xff]  }
 0x3eb   : > { %1458 = vtanh.f32 %v291_v60 }
 0x3f8   : > { %v1459_v63 = vpop.eup %1458 }
 0x3f9   : > { %v297_v0 = vrot.slane %v1459_v63, %v1741_v35 }
 0x3fb   : > { %298 = vrot.lane.b32.xlu0 %v297_v0, %s1639_s17 }
 0x46d   : > { %v299_v1 = vpop.permute.xlu0 %298 }
 0x46e   : > { %v1774_v2 = vmul.f32 %v1757_v51, %v299_v1  ;;  %v1254_v1 = vld [vmem:[%s1721_s3 + $0x4] sm:$0x1] }
 0x470   : > { %v318_v3 = vpack.c.bf16 %v1774_v2, %v1774_v2 }
 0x472   : > { %324 = vrot.lane.b32.xlu1 %v318_v3, %s1639_s17 }
 0x4e4   : > { %v325_v4 = vpop.permute.xlu1 %324 }
 0x4e5   : > { %1350 = vmatmul.mubr.msk.bf16.vlgmr.msra.gmra.mxu0 %vm90_vm2, %v325_v4 }
 0x4e6   : > { %1365 = vmatprep.mubr.msk.bf16.mxu0 %vm1635_vm1, %v1634_v5  ;;  %1362 = vmatpush3.bf16.msra.mxu0 %v1440_v57  ;;  %v1444_v57 = vld [vmem:[#allocation7 + $0x8] sm:$0xff]  }
 0x4e7   : > { %1363 = vmatprep.subr.bf16.mxu0 %v1634_v5 }
 0x4ea   : > { %1364 = vmatpush3.bf16.msra.mxu0 %v1441_v58  ;;  %v1445_v58 = vld [vmem:[#allocation7] sm:$0xff]  }
 0x4eb   : > { %1377 = vmatprep.subr.bf16.mxu0 %v1634_v5 }
 0x5a5   : > { %v375_v7 = vpop.f32.mrf.mxu0 }
 0x5a6   : > { %v381_v8 = vadd.f32 %v1228_v6, %v375_v7 }
 0x5a7   : > { %v1351_v9 = vpop.f32.mrf.mxu0 }
 0x5a8   : > { %v1232_v10 = vmul.f32 -1.442695, %v381_v8 }
 0x5a9   : > { %v378_v11 = vpop.f32.mrf.mxu0 }
 0x5aa   : > { %1460 = vpow2.f32 %v1232_v10 }
 0x5ab   : > { %v1352_v12 = vpop.f32.mrf.mxu0 }
 0x5b7   : > { %v1461_v13 = vpop.eup %1460 }
 0x5b8   : > { %v385_v14 = vadd.f32 1.0, %v1461_v13 }
 0x5ba   : > { %1462 = vrcp.f32 %v385_v14 }
 0x5c7   : > { %v1783_v15 = vpop.eup %1462 }
 0x5c8   : > { %1235 = vst.msk [vmem:[%s1729_s14 + $0x2] sm:$0x1] %vm56_vm0, %v1783_v15  ;;  %v397_v16 = vrot.slane %v1783_v15, %v1724_v22  ;;  %v388_v17 = vmul.f32 2.0, %v1783_v15 }
 0x5ca   : > { %v404_v18 = vrot.slane %v397_v16, %v1724_v22  ;;  %v1233_v19 = vadd.f32 -1.0, %v388_v17 }
 0x5cc   : > { %405 = vrot.lane.b32.xlu0 %v404_v18, %s1637_s15  ;;  %410 = vrot.lane.b32.xlu1 %v1233_v19, %s1638_s16 }
 0x63e   : > { %v406_v20 = vpop.permute.xlu0 %405  ;;  %v411_v21 = vpop.permute.xlu1 %410 }
 0x63f   : > { %v408_v24 = vmul.f32 %v406_v20, %v291_v60  ;;  %v413_v25 = vmul.f32 %v1783_v15, %v411_v21 }
 0x641   : > { %v414_v26 = vadd.f32 %v413_v25, %v408_v24  ;;  %v1442_v25 = vld [vmem:[#allocation7 + $0x8] sm:$0xff]  }
 0x643   : > { %1464 = vtanh.f32 %v414_v26 }
 0x650   : > { %v1465_v29 = vpop.eup %1464 }
 0x651   : > { %v420_v30 = vrot.slane %v1465_v29, %v1741_v35 }
 0x653   : > { %421 = vrot.lane.b32.xlu0 %v420_v30, %s1639_s17 }
 0x6c5   : > { %v422_v31 = vpop.permute.xlu0 %421 }
 0x6c6   : > { %v1800_v32 = vmul.f32 %v1783_v15, %v422_v31 }
 0x6c8   : > { %v441_v33 = vpack.c.bf16 %v1800_v32, %v1800_v32 }
 0x6ca   : > { %447 = vrot.lane.b32.xlu1 %v441_v33, %s1639_s17 }
 0x73c   : > { %v448_v34 = vpop.permute.xlu1 %447 }
 0x73d   : > { %1358 = vmatmul.mubr.msk.bf16.vlgmr.msra.gmra.mxu1 %vm90_vm2, %v448_v34  ;;  %v1267_v34 = vld [vmem:[%s1721_s3 + $0x5] sm:$0x1] }
 0x73e   : > { %1373 = vmatprep.mubr.msk.bf16.mxu1 %vm1635_vm1, %v1634_v5  ;;  %1370 = vmatpush3.bf16.msra.mxu1 %v1442_v25 }
 0x73f   : > { %1371 = vmatprep.subr.bf16.mxu1 %v1634_v5 }
 0x7fd   : > { %v498_v37 = vpop.f32.mrf.mxu1 }
 0x7fe   : > { %v504_v38 = vadd.f32 %v1241_v36, %v498_v37 }
 0x7ff   : > { %v1359_v40 = vpop.f32.mrf.mxu1 }
 0x800   : > { %v1245_v41 = vmul.f32 -1.442695, %v504_v38 }
 0x801   : > { %v501_v42 = vpop.f32.mrf.mxu1 }
 0x802   : > { %1466 = vpow2.f32 %v1245_v41 }
 0x803   : > { %v1360_v43 = vpop.f32.mrf.mxu1 }
 0x80f   : > { %v1467_v44 = vpop.eup %1466 }
 0x810   : > { %v508_v45 = vadd.f32 1.0, %v1467_v44 }
 0x812   : > { %1468 = vrcp.f32 %v508_v45 }
 0x81f   : > { %v1809_v46 = vpop.eup %1468 }
 0x820   : > { %1248 = vst.msk [vmem:[%s1729_s14 + $0x3] sm:$0x1] %vm56_vm0, %v1809_v46  ;;  %v520_v47 = vrot.slane %v1809_v46, %v1724_v22  ;;  %v511_v48 = vmul.f32 2.0, %v1809_v46 }
 0x822   : > { %v527_v49 = vrot.slane %v520_v47, %v1724_v22  ;;  %v1246_v50 = vadd.f32 -1.0, %v511_v48 }
 0x824   : > { %528 = vrot.lane.b32.xlu0 %v527_v49, %s1637_s15  ;;  %533 = vrot.lane.b32.xlu1 %v1246_v50, %s1638_s16 }
 0x896   : > { %v529_v52 = vpop.permute.xlu0 %528  ;;  %v534_v53 = vpop.permute.xlu1 %533 }
 0x897   : > { %v531_v54 = vmul.f32 %v529_v52, %v414_v26  ;;  %v536_v55 = vmul.f32 %v1809_v46, %v534_v53  ;;  %v1443_v26 = vld [vmem:[#allocation7] sm:$0xff]  }
 0x898   : > { %1372 = vmatpush3.bf16.msra.mxu1 %v1443_v26 }
 0x899   : > { %v537_v56 = vadd.f32 %v536_v55, %v531_v54  ;;  %1385 = vmatprep.subr.bf16.mxu1 %v1634_v5 }
 0x89b   : > { %1470 = vtanh.f32 %v537_v56 }
 0x8a8   : > { %v1471_v59 = vpop.eup %1470 }
 0x8a9   : > { %v543_v60 = vrot.slane %v1471_v59, %v1741_v35 }
 0x8ab   : > { %544 = vrot.lane.b32.xlu0 %v543_v60, %s1639_s17 }
 0x91d   : > { %v545_v61 = vpop.permute.xlu0 %544 }
 0x91e   : > { %v1826_v62 = vmul.f32 %v1809_v46, %v545_v61 }
 0x920   : > { %v564_v63 = vpack.c.bf16 %v1826_v62, %v1826_v62 }
 0x922   : > { %570 = vrot.lane.b32.xlu1 %v564_v63, %s1639_s17 }
 0x994   : > { %v571_v0 = vpop.permute.xlu1 %570 }
 0x995   : > { %1366 = vmatmul.mubr.msk.bf16.vlgmr.msra.gmra.mxu0 %vm90_vm2, %v571_v0 }
 0x996   : > { %1381 = vmatprep.mubr.msk.bf16.mxu0 %vm1635_vm1, %v1634_v5  ;;  %1378 = vmatpush3.bf16.msra.mxu0 %v1444_v57 }
 0x997   : > { %1379 = vmatprep.subr.bf16.mxu0 %v1634_v5 }
 0x99a   : > { %1380 = vmatpush3.bf16.msra.mxu0 %v1445_v58 }
 0xa55   : > { %v621_v3 = vpop.f32.mrf.mxu0 }
 0xa56   : > { %v627_v4 = vadd.f32 %v1254_v1, %v621_v3  ;;  %v1280_v3 = vld [vmem:[%s1721_s3 + $0x6] sm:$0x1] }
 0xa57   : > { %v1367_v6 = vpop.f32.mrf.mxu0 }
 0xa58   : > { %v1258_v7 = vmul.f32 -1.442695, %v627_v4 }
 0xa59   : > { %v624_v8 = vpop.f32.mrf.mxu0 }
 0xa5a   : > { %1472 = vpow2.f32 %v1258_v7 }
 0xa5b   : > { %v1368_v9 = vpop.f32.mrf.mxu0 }
 0xa67   : > { %v1473_v10 = vpop.eup %1472 }
 0xa68   : > { %v631_v11 = vadd.f32 1.0, %v1473_v10 }
 0xa6a   : > { %1474 = vrcp.f32 %v631_v11 }
 0xa77   : > { %v1835_v12 = vpop.eup %1474 }
 0xa78   : > { %1261 = vst.msk [vmem:[%s1729_s14 + $0x4] sm:$0x1] %vm56_vm0, %v1835_v12  ;;  %v643_v13 = vrot.slane %v1835_v12, %v1724_v22  ;;  %v634_v14 = vmul.f32 2.0, %v1835_v12 }
 0xa7a   : > { %v650_v16 = vrot.slane %v643_v13, %v1724_v22  ;;  %v1259_v17 = vadd.f32 -1.0, %v634_v14 }
 0xa7c   : > { %651 = vrot.lane.b32.xlu0 %v650_v16, %s1637_s15  ;;  %656 = vrot.lane.b32.xlu1 %v1259_v17, %s1638_s16 }
 0xaee   : > { %v652_v18 = vpop.permute.xlu0 %651  ;;  %v657_v19 = vpop.permute.xlu1 %656 }
 0xaef   : > { %v654_v20 = vmul.f32 %v652_v18, %v537_v56  ;;  %v659_v21 = vmul.f32 %v1835_v12, %v657_v19 }
 0xaf1   : > { %v660_v24 = vadd.f32 %v659_v21, %v654_v20 }
 0xaf3   : > { %1476 = vtanh.f32 %v660_v24 }
 0xb00   : > { %v1477_v27 = vpop.eup %1476 }
 0xb01   : > { %v666_v28 = vrot.slane %v1477_v27, %v1741_v35  ;;  %v1446_v27 = vld [vmem:[#allocation7 + $0x8] sm:$0xff]  }
 0xb03   : > { %667 = vrot.lane.b32.xlu0 %v666_v28, %s1639_s17  ;;  %v1447_v28 = vld [vmem:[#allocation7] sm:$0xff]  }
 0xb75   : > { %v668_v29 = vpop.permute.xlu0 %667 }
 0xb76   : > { %v1852_v30 = vmul.f32 %v1835_v12, %v668_v29 }
 0xb78   : > { %v687_v31 = vpack.c.bf16 %v1852_v30, %v1852_v30 }
 0xb7a   : > { %693 = vrot.lane.b32.xlu1 %v687_v31, %s1639_s17 }
 0xbec   : > { %v694_v33 = vpop.permute.xlu1 %693 }
 0xbed   : > { %1374 = vmatmul.mubr.msk.bf16.vlgmr.msra.gmra.mxu1 %vm90_vm2, %v694_v33 }
 0xbee   : > { %1389 = vmatprep.mubr.msk.bf16.mxu1 %vm1635_vm1, %v1634_v5  ;;  %1386 = vmatpush3.bf16.msra.mxu1 %v1446_v27 }
 0xbef   : > { %1387 = vmatprep.subr.bf16.mxu1 %v1634_v5 }
 0xbf2   : > { %1388 = vmatpush3.bf16.msra.mxu1 %v1447_v28 }
 0xcad   : > { %v744_v36 = vpop.f32.mrf.mxu1 }
 0xcae   : > { %v750_v37 = vadd.f32 %v1267_v34, %v744_v36 }
 0xcaf   : > { %v1375_v38 = vpop.f32.mrf.mxu1 }
 0xcb0   : > { %v1271_v40 = vmul.f32 -1.442695, %v750_v37  ;;  %v1293_v38 = vld [vmem:[%s1721_s3 + $0x7] sm:$0x1] }
 0xcb1   : > { %v747_v41 = vpop.f32.mrf.mxu1 }
 0xcb2   : > { %1478 = vpow2.f32 %v1271_v40 }
 0xcb3   : > { %v1376_v42 = vpop.f32.mrf.mxu1 }
 0xcbf   : > { %v1479_v43 = vpop.eup %1478 }
 0xcc0   : > { %v754_v44 = vadd.f32 1.0, %v1479_v43 }
 0xcc2   : > { %1480 = vrcp.f32 %v754_v44 }
 0xccf   : > { %v1861_v45 = vpop.eup %1480 }
 0xcd0   : > { %1274 = vst.msk [vmem:[%s1729_s14 + $0x5] sm:$0x1] %vm56_vm0, %v1861_v45  ;;  %v766_v47 = vrot.slane %v1861_v45, %v1724_v22  ;;  %v757_v48 = vmul.f32 2.0, %v1861_v45 }
 0xcd2   : > { %v773_v49 = vrot.slane %v766_v47, %v1724_v22  ;;  %v1272_v50 = vadd.f32 -1.0, %v757_v48 }
 0xcd4   : > { %774 = vrot.lane.b32.xlu0 %v773_v49, %s1637_s15  ;;  %779 = vrot.lane.b32.xlu1 %v1272_v50, %s1638_s16 }
 0xd46   : > { %v775_v52 = vpop.permute.xlu0 %774  ;;  %v780_v53 = vpop.permute.xlu1 %779 }
 0xd47   : > { %v777_v54 = vmul.f32 %v775_v52, %v660_v24  ;;  %v782_v55 = vmul.f32 %v1861_v45, %v780_v53 }
 0xd49   : > { %v783_v56 = vadd.f32 %v782_v55, %v777_v54 }
 0xd4b   : > { %1482 = vtanh.f32 %v783_v56 }
 0xd58   : > { %v1483_v59 = vpop.eup %1482 }
 0xd59   : > { %v789_v60 = vrot.slane %v1483_v59, %v1741_v35 }
 0xd5b   : > { %790 = vrot.lane.b32.xlu0 %v789_v60, %s1639_s17 }
 0xdcd   : > { %v791_v61 = vpop.permute.xlu0 %790 }
 0xdce   : > { %v1877_v63 = vmul.f32 %v1861_v45, %v791_v61 }
 0xdd0   : > { %v810_v0 = vpack.c.bf16 %v1877_v63, %v1877_v63 }
 0xdd2   : > { %816 = vrot.lane.b32.xlu1 %v810_v0, %s1639_s17 }
 0xe44   : > { %v817_v1 = vpop.permute.xlu1 %816 }
 0xe45   : > { %1382 = vmatmul.mubr.msk.bf16.vlgmr.msra.gmra.mxu0 %vm90_vm2, %v817_v1 }
 0xf05   : > { %v867_v4 = vpop.f32.mrf.mxu0 }
 0xf06   : > { %v873_v6 = vadd.f32 %v1280_v3, %v867_v4 }
 0xf07   : > { %v1383_v7 = vpop.f32.mrf.mxu0 }
 0xf08   : > { %v1284_v8 = vmul.f32 -1.442695, %v873_v6 }
 0xf09   : > { %v870_v9 = vpop.f32.mrf.mxu0 }
 0xf0a   : > { %1484 = vpow2.f32 %v1284_v8 }
 0xf0b   : > { %v1384_v10 = vpop.f32.mrf.mxu0 }
 0xf17   : > { %v1485_v11 = vpop.eup %1484 }
 0xf18   : > { %v877_v13 = vadd.f32 1.0, %v1485_v11 }
 0xf1a   : > { %1486 = vrcp.f32 %v877_v13 }
 0xf27   : > { %v1487_v14 = vpop.eup %1486 }
 0xf28   : > { %1287 = vst.msk [vmem:[%s1729_s14 + $0x6] sm:$0x1] %vm56_vm0, %v1487_v14  ;;  %v889_v16 = vrot.slane %v1487_v14, %v1724_v22  ;;  %v880_v17 = vmul.f32 2.0, %v1487_v14 }
 0xf2a   : > { %v896_v18 = vrot.slane %v889_v16, %v1724_v22  ;;  %v1285_v19 = vadd.f32 -1.0, %v880_v17 }
 0xf2c   : > { %897 = vrot.lane.b32.xlu0 %v896_v18, %s1637_s15  ;;  %902 = vrot.lane.b32.xlu1 %v1285_v19, %s1638_s16 }
 0xf9e   : > { %v898_v20 = vpop.permute.xlu0 %897  ;;  %v903_v21 = vpop.permute.xlu1 %902 }
 0xf9f   : > { %v900_v24 = vmul.f32 %v898_v20, %v783_v56  ;;  %v905_v25 = vmul.f32 %v1487_v14, %v903_v21 }
 0xfa1   : > { %v906_v26 = vadd.f32 %v905_v25, %v900_v24 }
 0xfa3   : > { %1488 = vtanh.f32 %v906_v26 }
 0xfb0   : > { %v1489_v29 = vpop.eup %1488 }
 0xfb1   : > { %v912_v31 = vrot.slane %v1489_v29, %v1741_v35 }
 0xfb3   : > { %913 = vrot.lane.b32.xlu0 %v912_v31, %s1639_s17 }
0x1025   : > { %v914_v33 = vpop.permute.xlu0 %913 }
0x1026   : > { %v1893_v34 = vmul.f32 %v1487_v14, %v914_v33 }
0x1028   : > { %v933_v36 = vpack.c.bf16 %v1893_v34, %v1893_v34 }
0x102a   : > { %939 = vrot.lane.b32.xlu1 %v933_v36, %s1639_s17 }
0x109c   : > { %v940_v37 = vpop.permute.xlu1 %939 }
0x109d   : > { %1390 = vmatmul.mubr.msk.bf16.vlgmr.msra.gmra.mxu1 %vm90_vm2, %v940_v37 }
0x115d   : > { %v990_v5 = vpop.f32.mrf.mxu1 }
0x115e   : > { %v996_v40 = vadd.f32 %v1293_v38, %v990_v5 }
0x115f   : > { %v1391_v41 = vpop.f32.mrf.mxu1 }
0x1160   : > { %v1297_v42 = vmul.f32 -1.442695, %v996_v40 }
0x1161   : > { %v993_v43 = vpop.f32.mrf.mxu1 }
0x1162   : > { %1490 = vpow2.f32 %v1297_v42 }
0x1163   : > { %v1392_v44 = vpop.f32.mrf.mxu1 }
0x116f   : > { %v1491_v47 = vpop.eup %1490 }
0x1170   : > { %v1000_v48 = vadd.f32 1.0, %v1491_v47 }
0x1172   : > { %1492 = vrcp.f32 %v1000_v48 }
0x117f   : > { %v1493_v49 = vpop.eup %1492 }
0x1180   : > { %1300 = vst.msk [vmem:[%s1729_s14 + $0x7] sm:$0x1] %vm56_vm0, %v1493_v49  ;;  %v1012_v50 = vrot.slane %v1493_v49, %v1724_v22  ;;  %v1003_v52 = vmul.f32 2.0, %v1493_v49 }
0x1182   : > { %v1019_v53 = vrot.slane %v1012_v50, %v1724_v22  ;;  %v1298_v54 = vadd.f32 -1.0, %v1003_v52 }
0x1184   : > { %1020 = vrot.lane.b32.xlu0 %v1019_v53, %s1637_s15  ;;  %1025 = vrot.lane.b32.xlu1 %v1298_v54, %s1638_s16 }
0x1188   : > { %181 = vrot.lane.b32.xlu1 %v1726_v23, %s1637_s15 }
0x118c   : > { %304 = vrot.lane.b32.xlu1 %v1757_v51, %s1637_s15 }
0x1190   : > { %427 = vrot.lane.b32.xlu1 %v1783_v15, %s1637_s15 }
0x1194   : > { %550 = vrot.lane.b32.xlu1 %v1809_v46, %s1637_s15 }
0x1198   : > { %673 = vrot.lane.b32.xlu1 %v1835_v12, %s1637_s15 }
0x119c   : > { %796 = vrot.lane.b32.xlu1 %v1861_v45, %s1637_s15 }
0x11a0   : > { %919 = vrot.lane.b32.xlu1 %v1487_v14, %s1637_s15 }
0x11a4   : > { %1042 = vrot.lane.b32.xlu1 %v1493_v49, %s1637_s15 }
0x11f6   : > { %v1021_v22 = vpop.permute.xlu0 %1020  ;;  %v1026_v23 = vpop.permute.xlu1 %1025 }
0x11f7   : > { %v1023_v55 = vmul.f32 %v1021_v22, %v906_v26  ;;  %v1028_v51 = vmul.f32 %v1493_v49, %v1026_v23 }
0x11f9   : > { %v1029_v56 = vadd.f32 %v1028_v51, %v1023_v55  }
0x11fa   : > { %v182_v57 = vpop.permute.xlu1 %181 }
0x11fb   : > { %1494 = vtanh.f32 %v1029_v56  ;;  %185 = vst.msk [vmem:[%s184_s18] sm:$0x1] %vm56_vm0, %v182_v57  ;;  %1055 = vst.msk [vmem:[#allocation3] sm:$0x1] (%p64_p10), %vm56_vm0, %v1029_v56 }
0x11fe   : > { %v305_v15 = vpop.permute.xlu1 %304 }
0x11ff   : > { %1224 = vst.msk [vmem:[%s184_s18 + $0x1] sm:$0x1] %vm56_vm0, %v305_v15 }
0x1202   : > { %v428_v46 = vpop.permute.xlu1 %427 }
0x1203   : > { %1237 = vst.msk [vmem:[%s184_s18 + $0x2] sm:$0x1] %vm56_vm0, %v428_v46 }
0x1206   : > { %v551_v12 = vpop.permute.xlu1 %550 }
0x1207   : > { %1250 = vst.msk [vmem:[%s184_s18 + $0x3] sm:$0x1] %vm56_vm0, %v551_v12 }
0x1208   : > { %v1495_v45 = vpop.eup %1494 }
0x1209   : > { %v1035_v58 = vrot.slane %v1495_v45, %v1741_v35 }
0x120a   : > { %v674_v59 = vpop.permute.xlu1 %673 }
0x120b   : > { %1263 = vst.msk [vmem:[%s184_s18 + $0x4] sm:$0x1] %vm56_vm0, %v674_v59  ;;  %1036 = vrot.lane.b32.xlu0 %v1035_v58, %s1639_s17 }
0x120e   : > { %v797_v60 = vpop.permute.xlu1 %796 }
0x120f   : > { %1276 = vst.msk [vmem:[%s184_s18 + $0x5] sm:$0x1] %vm56_vm0, %v797_v60  ;;  %187 = vrot.lane.b32.xlu0 %v1748_v39, %s1639_s17 }
0x1212   : > { %v920_v61 = vpop.permute.xlu1 %919 }
0x1213   : > { %1289 = vst.msk [vmem:[%s184_s18 + $0x6] sm:$0x1] %vm56_vm0, %v920_v61  ;;  %310 = vrot.lane.b32.xlu0 %v1774_v2, %s1639_s17 }
0x1216   : > { %v1043_v0 = vpop.permute.xlu1 %1042 }
0x1217   : > { %1302 = vst.msk [vmem:[%s184_s18 + $0x7] sm:$0x1] %vm56_vm0, %v1043_v0  ;;  %433 = vrot.lane.b32.xlu0 %v1800_v32, %s1639_s17 }
0x121b   : > { %556 = vrot.lane.b32.xlu0 %v1826_v62, %s1639_s17 }
0x121f   : > { %679 = vrot.lane.b32.xlu0 %v1852_v30, %s1639_s17 }
0x1223   : > { %802 = vrot.lane.b32.xlu0 %v1877_v63, %s1639_s17 }
0x1227   : > { %925 = vrot.lane.b32.xlu0 %v1893_v34, %s1639_s17 }
0x127d   : > { %v1037_v35 = vpop.permute.xlu0 %1036 }
0x127e   : > { %v1039_v39 = vmul.f32 %v1493_v49, %v1037_v35 }
0x1280   : > { %1048 = vrot.lane.b32.xlu0 %v1039_v39, %s1639_s17 }
0x1281   : > { %v188_v2 = vpop.permute.xlu0 %187 }
0x1282   : > { %191 = vst.msk [vmem:[%s190_s19] sm:$0x1] %vm56_vm0, %v188_v2 }
0x1285   : > { %v311_v32 = vpop.permute.xlu0 %310 }
0x1286   : > { %1226 = vst.msk [vmem:[%s190_s19 + $0x1] sm:$0x1] %vm56_vm0, %v311_v32 }
0x1289   : > { %v434_v62 = vpop.permute.xlu0 %433 }
0x128a   : > { %1239 = vst.msk [vmem:[%s190_s19 + $0x2] sm:$0x1] %vm56_vm0, %v434_v62 }
0x128d   : > { %v557_v30 = vpop.permute.xlu0 %556 }
0x128e   : > { %1252 = vst.msk [vmem:[%s190_s19 + $0x3] sm:$0x1] %vm56_vm0, %v557_v30 }
0x1291   : > { %v680_v63 = vpop.permute.xlu0 %679 }
0x1292   : > { %1265 = vst.msk [vmem:[%s190_s19 + $0x4] sm:$0x1] %vm56_vm0, %v680_v63 }
0x1295   : > { %v803_v1 = vpop.permute.xlu0 %802 }
0x1296   : > { %1278 = vst.msk [vmem:[%s190_s19 + $0x5] sm:$0x1] %vm56_vm0, %v803_v1 }
0x1299   : > { %v926_v3 = vpop.permute.xlu0 %925 }
0x129a   : > { %1291 = vst.msk [vmem:[%s190_s19 + $0x6] sm:$0x1] %vm56_vm0, %v926_v3  ;;  %v1989_v3 = vmov %v1029_v56 }
0x12ef   :  { %66 = sbr.rel (!%p64_p10) target bundleno = 40 (0x28), region = 103 }
0x12f2   : > { %v1049_v4 = vpop.permute.xlu0 %1048  }
0x12f3   : > { %1304 = vst.msk [vmem:[%s190_s19 + $0x7] sm:$0x1] %vm56_vm0, %v1049_v4  ;;  %v1990_v2 = vmov %v1049_v4  ;;  %1054 = vst.msk [vmem:[#allocation2] sm:$0x1] (%p64_p10), %vm56_vm0, %v1049_v4 }
0x12f4   :  { %1547 = shalt.err (!%p1544_p1)
}
0x12f5   :  { %1079 = dma.vmem_to_hbm [thread:$0]  %s1074_s21, 256, %s1987_s5, [#allocation11], %s1629_s24, %s1629_s24, %s1630_s25  }
0x12f6   :  { %s1556_s29 = scalar_lea.vmem %s1062_s23, 256  ;;  %p1561_p3 = scmp.lt.s32.totalorder %s1062_s23, %s1062_s23 }
0x12f7   :  { %p1557_p2 = scmp.ne.s32.totalorder %s1062_s23, %s1556_s29  ;;  %p1562_p4 = scmp.lt.s32.totalorder %s1556_s29, %s1556_s29 }
0x12f9   :  { %p1563_p5 = por %p1562_p4, %p1561_p3 }
0x12fb   :  { %p1564_p6 = pnand %p1563_p5, %p1557_p2 }
0x12fd   :  { %1567 = shalt.err (!%p1564_p6)
}
0x12fe   :  { %1067 = dma.vmem_to_hbm [thread:$0]  %s1062_s23, 256, %s1986_s4, [#allocation6], %s1629_s24, %s1629_s24, %s1630_s25  }
0x12ff   :  { %s1642_s8 = smov [#allocation12]  }
0x1300   :  { %s1085_s9 = sshll.u32 %s1642_s8, 4  ;;  %s1086_s9 = int_to_ptr.vmem [resolvable:$true] %s1085_s9 }
0x1301   :  { %s1576_s10 = scalar_lea.vmem %s1086_s9, 256  ;;  %p1581_p8 = scmp.lt.s32.totalorder %s1086_s9, %s1086_s9 }
0x1302   :  { %p1577_p7 = scmp.ne.s32.totalorder %s1086_s9, %s1576_s10  ;;  %p1582_p9 = scmp.lt.s32.totalorder %s1576_s10, %s1576_s10 }
0x1304   :  { %p1583_p10 = por %p1582_p9, %p1581_p8 }
0x1306   :  { %p1584_p11 = pnand %p1583_p10, %p1577_p7 }
0x1308   :  { %1587 = shalt.err (!%p1584_p11)
}
0x1309   :  { %1091 = dma.vmem_to_hbm [thread:$0]  %s1086_s9, 256, %s1988_s6, [#allocation11], %s1629_s24, %s1629_s24, %s1630_s25  }
0x130a   :  { %1612 = dma.done.wait [#allocation6], 256  }
0x130b   :  { %1613 = vsyncadd [#allocation6], 4294967040 }
0x130c   :  { %1614 = dma.done.wait [#allocation11], 512  }
0x130d   :  { %1615 = vsyncadd [#allocation11], 4294966784 }
0x130e   :  { %1101 = vsyncpa [#allocation5], 1 }
0x130f   :  { %1102 = vsyncpa [#allocation8], 1 }
0x1310   :  { %1103 = vsyncpa [#allocation6], 1 }
0x1311   :  { %1104 = vsyncpa [#allocation11], 1 }

</bundles_post_ra>
